<compile_context>
chip_gen: v6e
topology: v6e:2x2x1
jax: 0.10.0
libtpu: 0.0.40
codegen_flags: <defaults>
</compile_context>

<pallas_src>
import jax
import jax.numpy as jnp
from jax.experimental import pallas as pl
from jax.experimental.pallas import tpu as pltpu

FEAT_IN = 128          # d of fc_in (in == out)
NUM_VECTOR_DIM = 256   # output dim of fc (bias-free)
BATCH = 16

ROW_BLOCK = 256        # row tile used only when B is large (fills MXU M on v6e/v7x)


def clip_mapping_kernel(x_ref, w_ref, b_ref, o_ref):
    """One row block: y = x @ W + b with bf16 operands, f32 accumulate."""
    y = jnp.dot(
        x_ref[...], w_ref[...],
        preferred_element_type=jnp.float32,
    ) + b_ref[...]                                   # (tb, O) float32
    o_ref[...] = y.astype(o_ref.dtype)


def fold_params(w1, b1, w2):
    """One-time parameter prep (call once, cache the result).

    w1: (F, F), b1: (F,), w2: (O, F)  -- PyTorch nn.Linear layout.
    Returns W_folded (F, O) bf16 and b_folded (1, O) f32.
    Folding is exact in f32 because there is no activation between fc_in and fc.
    """
    w1t = jnp.transpose(w1).astype(jnp.float32)      # (F, F)
    w2t = jnp.transpose(w2).astype(jnp.float32)      # (F, O)
    w_folded = (w1t @ w2t).astype(jnp.bfloat16)      # (F, O)  bf16 for the MXU
    b_folded = (b1.astype(jnp.float32) @ w2t).reshape(1, -1)  # (1, O) f32
    return w_folded, b_folded


def clip_mapping(x, w_folded, b_folded):
    """x: (B, F) float32.  w_folded/b_folded from fold_params (prepped once)."""
    B, F = x.shape
    O = w_folded.shape[1]
    out_dtype = x.dtype

    # Cast activations to bf16 in the wrapper (halves activation DMA; no in-kernel cast).
    xb = x.astype(jnp.bfloat16)

    # Small B: one block, whole arrays resident in VMEM (weights <70 KB).
    # Large B: tile rows at ROW_BLOCK and mark the axis parallel (2 TCs on v7x).
    if B >= 2 * ROW_BLOCK and B % ROW_BLOCK == 0:
        tb = ROW_BLOCK
    else:
        tb = B
    n_blocks = B // tb

    return pl.pallas_call(
        clip_mapping_kernel,
        out_shape=jax.ShapeDtypeStruct((B, O), out_dtype),
        grid=(n_blocks,),
        in_specs=[
            pl.BlockSpec((tb, F), lambda i: (i, 0)),   # activations: row block i
            pl.BlockSpec((F, O), lambda i: (0, 0)),    # folded weight (constant)
            pl.BlockSpec((1, O), lambda i: (0, 0)),    # folded bias   (constant)
        ],
        out_specs=pl.BlockSpec((tb, O), lambda i: (i, 0)),
        compiler_params=pltpu.CompilerParams(
            dimension_semantics=("parallel",),
        ),
    )(xb, w_folded, b_folded)


def reference(x, w1, b1, w2):
    """Pure-JAX float32 reference mirroring the PyTorch module."""
    h = x @ w1.T + b1
    return h @ w2.T


if __name__ == "__main__":
    key = jax.random.PRNGKey(0)
    k_x, k_w1, k_b1, k_w2 = jax.random.split(key, 4)

    # Parameters mimicking the module's kaiming_normal_ init (std = sqrt(2/fan_in));
    # fc_in keeps its default (small uniform-ish) bias, fc has no bias.
    std = (2.0 / FEAT_IN) ** 0.5
    w1 = jax.random.normal(k_w1, (FEAT_IN, FEAT_IN), jnp.float32) * std
    b1 = (jax.random.uniform(k_b1, (FEAT_IN,), jnp.float32) - 0.5) * (2.0 / FEAT_IN ** 0.5)
    w2 = jax.random.normal(k_w2, (NUM_VECTOR_DIM, FEAT_IN), jnp.float32) * std

    x = jax.random.normal(k_x, (BATCH, FEAT_IN), jnp.float32)

    # One-time weight prep (cached by the caller; NOT part of the per-call path).
    w_folded, b_folded = fold_params(w1, b1, w2)
    w_folded = jax.block_until_ready(w_folded)
    b_folded = jax.block_until_ready(b_folded)

    out = jax.block_until_ready(clip_mapping(x, w_folded, b_folded))
    ref = reference(x, w1, b1, w2)

    assert out.shape == (BATCH, NUM_VECTOR_DIM) and out.dtype == x.dtype
    # Tolerance relaxed intentionally: the folded weight and the activations are
    # bf16 operands (f32 accumulate), per the performance review.
    max_err = float(jnp.abs(out - ref).max())
    assert jnp.allclose(out, ref, atol=5e-2, rtol=5e-2), max_err
    print("KERNEL_OK")
</pallas_src>

<mosaic_0001>
module attributes {stable_mosaic.version = 11 : i64} {
  func.func @clip_mapping_kernel(%arg0: i32, %arg1: memref<16x128xbf16, #tpu.memory_space<vmem>>, %arg2: memref<128x256xbf16, #tpu.memory_space<vmem>>, %arg3: memref<1x256xf32, #tpu.memory_space<vmem>>, %arg4: memref<16x256xf32, #tpu.memory_space<vmem>>) attributes {dimension_semantics = [#tpu.dimension_semantics<parallel>], iteration_bounds = array<i64: 1>, scalar_prefetch = 0 : i64, scratch_operands = 0 : i64, tpu.core_type = #tpu.core_type<tc>, window_params = [{transform_indices = @transform_0, window_bounds = array<i64: 16, 128>}, {pipeline_mode = #tpu.pipeline_mode<synchronous>, transform_indices = @transform_1, window_bounds = array<i64: 128, 256>}, {pipeline_mode = #tpu.pipeline_mode<synchronous>, transform_indices = @transform_2, window_bounds = array<i64: 1, 256>}, {transform_indices = @transform_3, window_bounds = array<i64: 16, 256>}]} {
    %c0 = arith.constant 0 : index
    %c0_0 = arith.constant 0 : index
    %0 = vector.load %arg1[%c0, %c0_0] : memref<16x128xbf16, #tpu.memory_space<vmem>>, vector<16x128xbf16>
    %c0_1 = arith.constant 0 : index
    %c0_2 = arith.constant 0 : index
    %1 = vector.load %arg2[%c0_1, %c0_2] : memref<128x256xbf16, #tpu.memory_space<vmem>>, vector<128x256xbf16>
    %cst = arith.constant dense<0.000000e+00> : vector<16x256xf32>
    %2 = tpu.matmul %0, %1, %cst {dimension_numbers = #tpu.dot_dimension_numbers<[1], [0], [0], [1], [0, 0, 1, 1], [], []>} : vector<16x128xbf16>, vector<128x256xbf16>, vector<16x256xf32> -> vector<16x256xf32>
    %c0_3 = arith.constant 0 : index
    %c0_4 = arith.constant 0 : index
    %3 = vector.load %arg3[%c0_3, %c0_4] : memref<1x256xf32, #tpu.memory_space<vmem>>, vector<1x256xf32>
    %4 = vector.broadcast %3 : vector<1x256xf32> to vector<16x256xf32>
    %5 = arith.addf %2, %4 : vector<16x256xf32>
    %c0_5 = arith.constant 0 : index
    %c0_6 = arith.constant 0 : index
    %6 = vector.load %arg4[%c0_5, %c0_6] : memref<16x256xf32, #tpu.memory_space<vmem>>, vector<16x256xf32>
    tpu.vector_store %arg4[%c0_5, %c0_6], %5 {strides = array<i32>} : memref<16x256xf32, #tpu.memory_space<vmem>>, vector<16x256xf32>,
    return
  }
  func.func @transform_0(%arg0: i32) -> (i32, i32) {
    %c0_i32 = arith.constant 0 : i32
    %c0_i32_0 = arith.constant 0 : i32
    return %arg0, %c0_i32 : i32, i32
  }
  func.func @transform_1(%arg0: i32) -> (i32, i32) {
    %c0_i32 = arith.constant 0 : i32
    %c0_i32_0 = arith.constant 0 : i32
    %c0_i32_1 = arith.constant 0 : i32
    return %c0_i32, %c0_i32_0 : i32, i32
  }
  func.func @transform_2(%arg0: i32) -> (i32, i32) {
    %c0_i32 = arith.constant 0 : i32
    %c0_i32_0 = arith.constant 0 : i32
    %c0_i32_1 = arith.constant 0 : i32
    return %c0_i32, %c0_i32_0 : i32, i32
  }
  func.func @transform_3(%arg0: i32) -> (i32, i32) {
    %c0_i32 = arith.constant 0 : i32
    %c0_i32_0 = arith.constant 0 : i32
    return %arg0, %c0_i32 : i32, i32
  }
}

</mosaic_0001>

<bundles_post_ra>
// kernel: tpu_custom_call.1
= control target key start
LH: loop header
LB: loop body
LE: loop exit
PB: predicated region body
PF: predicated region fallthrough
CT: control target
= control target key end

     0   :  { %8 = vsyncpa [#allocation3], 0  ;;  %s385_s0 = inlined_call_operand.hbm [shape: bf16[16,128], index: 0, kind: input, shape index: {}]   ;;  %s386_s1 = inlined_call_operand.hbm [shape: bf16[128,256], index: 1, kind: input, shape index: {}]   ;;  %s387_s2 = inlined_call_operand.vmem [shape: f32[1,256], index: 2, kind: input, shape index: {}]   ;;  %s388_s3 = inlined_call_operand.hbm [shape: f32[16,256], index: 3, kind: output, shape index: {}]  }
   0x1   :  { %9 = vsyncpa [#allocation6], 0 }
   0x2   :  { %10 = vsyncpa [#allocation4], 0  ;;  %s343_s12 = smov [#allocation2]  }
   0x3   :  { %s16_s13 = sshll.u32 %s343_s12, 4  ;;  %s17_s13 = int_to_ptr.vmem [resolvable:$true] %s16_s13 }
   0x4   :  { %s285_s14 = scalar_lea.vmem %s17_s13, 128  ;;  %p290_p1 = scmp.lt.s32.totalorder %s17_s13, %s17_s13 }
   0x5   :  { %p286_p0 = scmp.ne.s32.totalorder %s17_s13, %s285_s14  ;;  %p291_p2 = scmp.lt.s32.totalorder %s285_s14, %s285_s14 }
   0x7   :  { %p292_p3 = por %p291_p2, %p290_p1 }
   0x9   :  { %p293_p4 = pnand %p292_p3, %p286_p0 }
   0xb   :  { %296 = shalt.err (!%p293_p4)
}
   0xc   :  { %s344_s15 = smov 64   ;;  %s345_s16 = smov 4  }
   0xd   :  { %22 = dma.hbm_to_vmem [thread:$0]  %s385_s0, 128, %s17_s13, [#allocation3], %s344_s15, %s344_s15, %s345_s16  }
   0xe   :  { %s346_s19 = smov [#allocation5]  }
   0xf   :  { %s28_s20 = sshll.u32 %s346_s19, 4  ;;  %s29_s20 = int_to_ptr.vmem [resolvable:$true] %s28_s20 }
  0x10   :  { %s305_s21 = scalar_lea.vmem %s29_s20, 2048  ;;  %p310_p6 = scmp.lt.s32.totalorder %s29_s20, %s29_s20 }
  0x11   :  { %p306_p5 = scmp.ne.s32.totalorder %s29_s20, %s305_s21  ;;  %p311_p7 = scmp.lt.s32.totalorder %s305_s21, %s305_s21 }
  0x13   :  { %p312_p8 = por %p311_p7, %p310_p6 }
  0x15   :  { %p313_p9 = pnand %p312_p8, %p306_p5 }
  0x17   :  { %316 = shalt.err (!%p313_p9)
}
  0x18   :  { %s347_s22 = smov 128   ;;  %s348_s23 = smov 8  }
  0x19   :  { %34 = dma.hbm_to_vmem [thread:$0]  %s386_s1, 2048, %s29_s20, [#allocation6], %s347_s22, %s347_s22, %s348_s23  }
  0x1a   :  { %337 = dma.done.wait [#allocation3], 128  }
  0x1b   :  { %338 = vsyncadd [#allocation3], 4294967168 }
  0x1c   :  { %339 = dma.done.wait [#allocation6], 2048  }
  0x1d   :  { %340 = vsyncadd [#allocation6], 4294965248  ;;  %v349_v0 = vmov 0   ;;  %v252_v1 = vld [vmem:[#allocation5 + $0x74] ss:$8 sps:$4 sm:$0xff]   ;;  %v64_v18 = vlaneseq  ;;  %s350_s26 = smov [#allocation7]  }
  0x1e   :  { %192 = vmatprep.mubr.bf16.mxu0 %v349_v0  ;;  %v254_v2 = vld [vmem:[#allocation5 + $0x70] ss:$8 sps:$4 sm:$0xff]   ;;  %160 = vmatprep.subr.bf16.mxu0 %v252_v1  ;;  %v255_v3 = vld [vmem:[#allocation5 + $0x64] ss:$8 sps:$4 sm:$0xff]   ;;  %v257_v4 = vld [vmem:[#allocation5 + $0x60] ss:$8 sps:$4 sm:$0xff]  }
  0x1f   :  { %161 = vmatpush1.bf16.msra.mxu0 %v254_v2  ;;  %v258_v5 = vld [vmem:[#allocation5 + $0x54] ss:$8 sps:$4 sm:$0xff]   ;;  %v260_v6 = vld [vmem:[#allocation5 + $0x50] ss:$8 sps:$4 sm:$0xff]   ;;  %v261_v7 = vld [vmem:[#allocation5 + $0x44] ss:$8 sps:$4 sm:$0xff]  }
  0x20   :  { %162 = vmatprep.subr.bf16.mxu0 %v255_v3  ;;  %v263_v8 = vld [vmem:[#allocation5 + $0x40] ss:$8 sps:$4 sm:$0xff]   ;;  %v264_v9 = vld [vmem:[#allocation5 + $0x34] ss:$8 sps:$4 sm:$0xff]   ;;  %v266_v10 = vld [vmem:[#allocation5 + $0x30] ss:$8 sps:$4 sm:$0xff]  }
  0x21   :  { %v267_v11 = vld [vmem:[#allocation5 + $0x24] ss:$8 sps:$4 sm:$0xff]   ;;  %v269_v12 = vld [vmem:[#allocation5 + $0x20] ss:$8 sps:$4 sm:$0xff]   ;;  %v270_v13 = vld [vmem:[#allocation5 + $0x14] ss:$8 sps:$4 sm:$0xff]  }
  0x22   :  { %v272_v14 = vld [vmem:[#allocation5 + $0x10] ss:$8 sps:$4 sm:$0xff]   ;;  %v273_v15 = vld [vmem:[#allocation5 + $0x4] ss:$8 sps:$4 sm:$0xff]   ;;  %v275_v16 = vld [vmem:[#allocation5] ss:$8 sps:$4 sm:$0xff]  }
  0x23   :  { %163 = vmatpush1.bf16.msra.mxu0 %v257_v4  ;;  %v276_v17 = vld [vmem:[#allocation2] sm:$0xff]   ;;  %v65_v19 = vshrl.u32 %v64_v18, 7  ;;  %s212_s27 = sshll.u32 %s350_s26, 4  ;;  %s213_s27 = int_to_ptr.vmem [resolvable:$true] %s212_s27 }
  0x24   :  { %164 = vmatprep.subr.bf16.mxu0 %v258_v5  ;;  %v62_v21 = vld [vmem:[%s387_s2] sm:$0x3]  ;;  %s317_s28 = scalar_lea.vmem %s213_s27, 512  ;;  %p322_p11 = scmp.lt.s32.totalorder %s213_s27, %s213_s27 }
  0x25   :  { %v66_v20 = vsub.s32 0, %v65_v19  ;;  %v70_v22 = vsub.s32 1, %v65_v19  ;;  %p318_p10 = scmp.ne.s32.totalorder %s213_s27, %s317_s28  ;;  %p323_p12 = scmp.lt.s32.totalorder %s317_s28, %s317_s28 }
  0x27   :  { %165 = vmatpush1.bf16.msra.mxu0 %v260_v6  ;;  %v67_v23 = vrot.slane %v62_v21, %v66_v20  ;;  %v71_v24 = vrot.slane %v62_v21, %v70_v22  ;;  %p324_p13 = por %p323_p12, %p322_p11 }
  0x28   :  { %166 = vmatprep.subr.bf16.mxu0 %v261_v7 }
  0x29   :  { %p325_p0 = pnand %p324_p13, %p318_p10 }
  0x2b   :  { %167 = vmatpush1.bf16.msra.mxu0 %v263_v8 }
  0x2c   :  { %168 = vmatprep.subr.bf16.mxu0 %v264_v9 }
  0x2f   :  { %169 = vmatpush1.bf16.msra.mxu0 %v266_v10 }
  0x30   :  { %170 = vmatprep.subr.bf16.mxu0 %v267_v11 }
  0x33   :  { %171 = vmatpush1.bf16.msra.mxu0 %v269_v12 }
  0x34   :  { %172 = vmatprep.subr.bf16.mxu0 %v270_v13 }
  0x37   :  { %173 = vmatpush1.bf16.msra.mxu0 %v272_v14 }
  0x38   :  { %174 = vmatprep.subr.bf16.mxu0 %v273_v15 }
  0x3b   :  { %175 = vmatpush1.bf16.msra.mxu0 %v275_v16 }
  0x3e   :  { %193 = vmatmul.mubr.bf16.vlgmr.msra.gmra.mxu0 %v276_v17 }
  0xfe   :  { %v194_v25 = vpop.f32.mrf.mxu0 }
  0xff   :  { %v195_v26 = vadd.f32 %v194_v25, %v67_v23 }
 0x100   :  { %v196_v27 = vpop.f32.mrf.mxu0 }
 0x101   :  { %203 = vst [vmem:[#allocation7] sm:$0xff] %v195_v26  ;;  %v197_v28 = vadd.f32 %v196_v27, %v71_v24 }
 0x102   :  { %v198_v29 = vpop.f32.mrf.mxu0 }
 0x103   :  { %204 = vst [vmem:[#allocation7 + $0x8] sm:$0xff] %v197_v28  ;;  %v199_v30 = vadd.f32 %v198_v29, %v67_v23 }
 0x104   :  { %v200_v31 = vpop.f32.mrf.mxu0 }
 0x105   :  { %205 = vst [vmem:[#allocation7 + $0x10] sm:$0xff] %v199_v30  ;;  %v201_v32 = vadd.f32 %v200_v31, %v71_v24 }
 0x107   :  { %206 = vst [vmem:[#allocation7 + $0x18] sm:$0xff] %v201_v32 }
 0x108   :  { %328 = shalt.err (!%p325_p0)
}
 0x109   :  { %s351_s2 = smov 256   ;;  %s352_s29 = smov 16  }
 0x10a   :  { %218 = dma.vmem_to_hbm [thread:$0]  %s213_s27, 512, %s388_s3, [#allocation4], %s351_s2, %s351_s2, %s352_s29  }
 0x10b   :  { %341 = dma.done.wait [#allocation4], 512  }
 0x10c   :  { %342 = vsyncadd [#allocation4], 4294966784 }
 0x10d   :  { %222 = vsyncpa [#allocation3], 1 }
 0x10e   :  { %223 = vsyncpa [#allocation6], 1 }
 0x10f   :  { %224 = vsyncpa [#allocation4], 1 }

</bundles_post_ra>
